<compile_context>
chip_gen: v5e
topology: v5e:2x2
jax: 0.10.0
libtpu: 0.0.40
codegen_flags: <defaults>
</compile_context>

<pallas_src>
import functools

import jax
import jax.numpy as jnp
from jax.experimental import pallas as pl
from jax.experimental.pallas import tpu as pltpu


def _round_up(x, m):
    return ((x + m - 1) // m) * m


def _device_vmem_bytes():
    """Physical VMEM per TensorCore; conservative fallback if the query fails."""
    try:
        return int(pltpu.get_tpu_info().vmem_capacity_bytes)
    except Exception:
        return 64 << 20  # v7x-sized fallback works on every generation


def _pick_ffn_tile(ffn_dim, tf_req):
    """ffn chunk size: multiple of 256 (>=512 preferred) when ffn_dim allows,
    multiple of 128 for small ffn_dim.  Caller pads ffn_dim up to a multiple."""
    if ffn_dim <= 256:
        return _round_up(ffn_dim, 128)
    gran = 256 if ffn_dim >= 512 else 128
    return max(gran, (min(tf_req, ffn_dim) // gran) * gran)


def prepare_proj_weight(w_proj):
    """One-time (model-load) repack of the c_proj weight:
    PyTorch (n_embd, ffn_dim) -> (ffn_dim, n_embd), so every ffn chunk is a
    contiguous row slab and the projection is a canonical MXU contraction."""
    return jnp.asarray(w_proj).T


def _mlp_kernel(x_ref, w_fc_ref, w_fc2_ref, w_proj_ref, o_ref, acc_ref):
    """Grid = (row_tiles, ffn_chunks).  ffn axis is a streamed reduction."""
    j = pl.program_id(1)

    x = x_ref[...]            # (tm, D)
    w_fc = w_fc_ref[...]      # (tf, D)   PyTorch (out, in) layout, ffn chunk
    w_fc2 = w_fc2_ref[...]    # (tf, D)
    wp = w_proj_ref[...]      # (tf, D)   pre-transposed c_proj chunk

    # x @ W^T : contract last dim of x with last dim of the (out, in) weight.
    dn_nt = (((1,), (1,)), ((), ()))
    x1 = jax.lax.dot_general(x, w_fc, dn_nt,
                             preferred_element_type=jnp.float32)   # (tm, tf)
    x2 = jax.lax.dot_general(x, w_fc2, dn_nt,
                             preferred_element_type=jnp.float32)   # (tm, tf)

    # SiLU gate in f32 (exp lands on the EUP; v5e has no bf16 VPU/EUP path).
    h = x1 * (x2 * jax.nn.sigmoid(x2))                              # (tm, tf) f32

    # Partial projection for this ffn chunk: canonical (tm,tf)x(tf,D) contraction.
    partial = jnp.dot(h.astype(wp.dtype), wp,
                      preferred_element_type=jnp.float32)           # (tm, D)

    @pl.when(j == 0)
    def _():                       # first chunk: write, no zero-init RMW
        acc_ref[...] = partial

    @pl.when(j > 0)
    def _():
        acc_ref[...] += partial

    @pl.when(j == pl.num_programs(1) - 1)
    def _():
        o_ref[...] = acc_ref[...].astype(o_ref.dtype)


def mlp_pallas(x, w_fc, w_fc2, w_proj_t, *, tm=None, tf=None):
    """x: [B, T, n_embd].  w_fc/w_fc2: [ffn_dim, n_embd] (PyTorch (out, in)
    layouts).  w_proj_t: [ffn_dim, n_embd] = prepare_proj_weight(c_proj.weight)."""
    B, T, D = x.shape
    Fd, D2 = w_fc.shape
    assert D2 == D and w_fc2.shape == (Fd, D) and w_proj_t.shape == (Fd, D)

    M = B * T
    x2d = x.reshape(M, D)

    vmem_cap = _device_vmem_bytes()
    cap = vmem_cap - vmem_cap // 8           # ~12% headroom on physical VMEM

    # Row tile: big (roofline), device-aware default; clamp for tiny M (sublane
    # aligned).  v5e users who want a smaller tm can override.
    if tm is None:
        tm = 1024 if vmem_cap >= (96 << 20) else 512
    tm = max(8, min(_round_up(tm, 8), _round_up(M, 8)))

    # ffn chunk: multiple of 256 (>=512 preferred); ffn_dim padded below if needed.
    if tf is None:
        tf = 512
    tf = _pick_ffn_tile(Fd, tf)

    xsz = jnp.dtype(x.dtype).itemsize
    wsz = jnp.dtype(w_fc.dtype).itemsize
    osz = xsz

    def budget(tm_, tf_):
        return (2 * tm_ * D * xsz        # x tile (double-buffered)
                + 6 * tf_ * D * wsz      # w_fc + w_fc2 + w_proj chunks (x2 buffers)
                + 2 * tm_ * D * osz      # output tile
                + tm_ * D * 4            # f32 accumulator scratch
                + 3 * tm_ * tf_ * 4)     # x1 / x2 / h intermediates

    # Shrink to fit the device: tf first (keep the row tile / arithmetic
    # intensity), then tm.
    while budget(tm, tf) > cap and tf > 256:
        tf -= 256
    while budget(tm, tf) > cap and tm > 256:
        tm = max(256, _round_up(tm // 2, 8))

    # Pad rows to a multiple of tm; pad ffn_dim to a multiple of tf (zero rows are
    # exact no-ops: x1 = x2 = 0 -> silu gate 0 -> zero contribution to the output).
    Mp = _round_up(M, tm)
    if Mp != M:
        x2d = jnp.pad(x2d, ((0, Mp - M), (0, 0)))
    Fp = _round_up(Fd, tf)
    if Fp != Fd:
        fpad = ((0, Fp - Fd), (0, 0))
        w_fc = jnp.pad(w_fc, fpad)
        w_fc2 = jnp.pad(w_fc2, fpad)
        w_proj_t = jnp.pad(w_proj_t, fpad)

    n_row = Mp // tm
    n_ffn = Fp // tf

    vmem_limit = int(min(max(budget(tm, tf) * 1.3 + (4 << 20), 32 << 20), cap))

    out2d = pl.pallas_call(
        _mlp_kernel,
        out_shape=jax.ShapeDtypeStruct((Mp, D), x.dtype),
        grid_spec=pltpu.PrefetchScalarGridSpec(
            num_scalar_prefetch=0,
            grid=(n_row, n_ffn),
            in_specs=[
                pl.BlockSpec((tm, D), lambda i, j: (i, 0)),   # x row tile
                pl.BlockSpec((tf, D), lambda i, j: (j, 0)),   # W_fc ffn chunk
                pl.BlockSpec((tf, D), lambda i, j: (j, 0)),   # W_fc2 ffn chunk
                pl.BlockSpec((tf, D), lambda i, j: (j, 0)),   # W_proj^T ffn chunk
            ],
            out_specs=pl.BlockSpec((tm, D), lambda i, j: (i, 0)),  # resident over j
            scratch_shapes=[pltpu.VMEM((tm, D), jnp.float32)],
        ),
        compiler_params=pltpu.CompilerParams(
            dimension_semantics=("parallel", "arbitrary"),
            vmem_limit_bytes=vmem_limit,
        ),
    )(x2d, w_fc, w_fc2, w_proj_t)

    return out2d[:M].reshape(B, T, D)


def mlp_pallas_from_torch_layout(x, w_fc, w_fc2, w_proj, **kw):
    """Convenience: accepts the raw PyTorch c_proj layout (n_embd, ffn_dim);
    prefer calling prepare_proj_weight once at model load instead."""
    return mlp_pallas(x, w_fc, w_fc2, prepare_proj_weight(w_proj), **kw)


def mlp_reference(x, w_fc, w_fc2, w_proj):
    """Pure-JAX reference mirroring the PyTorch forward exactly (f32)."""
    xf = x.astype(jnp.float32)
    x1 = jnp.einsum("btd,fd->btf", xf, w_fc.astype(jnp.float32))
    x2 = jnp.einsum("btd,fd->btf", xf, w_fc2.astype(jnp.float32))
    x2 = x2 * jax.nn.sigmoid(x2)
    h = x1 * x2
    return jnp.einsum("btf,df->btd", h, w_proj.astype(jnp.float32))


if __name__ == "__main__":
    # Small config consistent with the module; D multiple of 128 keeps output
    # stores lane-dense, ffn_dim=512 with tf=256 exercises the streamed reduction
    # (two ffn chunks, first-chunk write + second-chunk accumulate).
    B, T, n_embd, ffn_dim = 2, 8, 128, 512

    key = jax.random.PRNGKey(0)
    k_x, k1, k2, k3 = jax.random.split(key, 4)

    x = jax.random.normal(k_x, (B, T, n_embd), dtype=jnp.float32)
    # nn.Linear(in, out, bias=False) weight shape is (out, in).
    w_fc = jax.random.normal(k1, (ffn_dim, n_embd), dtype=jnp.float32) * 0.02
    w_fc2 = jax.random.normal(k2, (ffn_dim, n_embd), dtype=jnp.float32) * 0.02
    w_proj = jax.random.normal(k3, (n_embd, ffn_dim), dtype=jnp.float32) * 0.02

    # One-time (model-load style) weight repack, done outside the jitted call.
    w_proj_t = prepare_proj_weight(w_proj)

    run = jax.jit(functools.partial(mlp_pallas, tf=256))
    out = jax.block_until_ready(run(x, w_fc, w_fc2, w_proj_t))

    ref = mlp_reference(x, w_fc, w_fc2, w_proj)
    assert out.shape == (B, T, n_embd)
    assert jnp.allclose(out, ref, atol=1e-4, rtol=1e-4), "f32 mismatch vs reference"

    # bf16 weights/activations (the recommended production path): f32 accumulation
    # inside the kernel, loose tolerance vs the f32 reference.
    out_bf16 = jax.block_until_ready(
        run(x.astype(jnp.bfloat16), w_fc.astype(jnp.bfloat16),
            w_fc2.astype(jnp.bfloat16), w_proj_t.astype(jnp.bfloat16)))
    assert jnp.allclose(out_bf16.astype(jnp.float32), ref, atol=1e-2, rtol=1e-1), \
        "bf16 mismatch vs reference"

    print("KERNEL_OK")
</pallas_src>

<mosaic_0001>
module attributes {stable_mosaic.version = 11 : i64} {
  func.func @_mlp_kernel(%arg0: i32, %arg1: i32, %arg2: memref<16x128xf32, #tpu.memory_space<vmem>>, %arg3: memref<256x128xf32, #tpu.memory_space<vmem>>, %arg4: memref<256x128xf32, #tpu.memory_space<vmem>>, %arg5: memref<256x128xf32, #tpu.memory_space<vmem>>, %arg6: memref<16x128xf32, #tpu.memory_space<vmem>>, %arg7: memref<16x128xf32, #tpu.memory_space<vmem>>) attributes {dimension_semantics = [#tpu.dimension_semantics<parallel>, #tpu.dimension_semantics<arbitrary>], iteration_bounds = array<i64: 1, 2>, scalar_prefetch = 0 : i64, scratch_operands = 1 : i64, tpu.core_type = #tpu.core_type<tc>, window_params = [{transform_indices = @transform_0, window_bounds = array<i64: 16, 128>}, {transform_indices = @transform_1, window_bounds = array<i64: 256, 128>}, {transform_indices = @transform_2, window_bounds = array<i64: 256, 128>}, {transform_indices = @transform_3, window_bounds = array<i64: 256, 128>}, {transform_indices = @transform_4, window_bounds = array<i64: 16, 128>}]} {
    %c0 = arith.constant 0 : index
    %c0_0 = arith.constant 0 : index
    %0 = vector.load %arg2[%c0, %c0_0] : memref<16x128xf32, #tpu.memory_space<vmem>>, vector<16x128xf32>
    %c0_1 = arith.constant 0 : index
    %c0_2 = arith.constant 0 : index
    %1 = vector.load %arg3[%c0_1, %c0_2] : memref<256x128xf32, #tpu.memory_space<vmem>>, vector<256x128xf32>
    %c0_3 = arith.constant 0 : index
    %c0_4 = arith.constant 0 : index
    %2 = vector.load %arg4[%c0_3, %c0_4] : memref<256x128xf32, #tpu.memory_space<vmem>>, vector<256x128xf32>
    %c0_5 = arith.constant 0 : index
    %c0_6 = arith.constant 0 : index
    %3 = vector.load %arg5[%c0_5, %c0_6] : memref<256x128xf32, #tpu.memory_space<vmem>>, vector<256x128xf32>
    %cst = arith.constant dense<0.000000e+00> : vector<16x256xf32>
    %4 = tpu.matmul %0, %1, %cst {dimension_numbers = #tpu.dot_dimension_numbers<[1], [1], [0], [0], [0, 0, 1, 0], [], []>} : vector<16x128xf32>, vector<256x128xf32>, vector<16x256xf32> -> vector<16x256xf32>
    %cst_7 = arith.constant dense<0.000000e+00> : vector<16x256xf32>
    %5 = tpu.matmul %0, %2, %cst_7 {dimension_numbers = #tpu.dot_dimension_numbers<[1], [1], [0], [0], [0, 0, 1, 0], [], []>} : vector<16x128xf32>, vector<256x128xf32>, vector<16x256xf32> -> vector<16x256xf32>
    %6 = arith.negf %5 : vector<16x256xf32>
    %7 = math.exp %6 : vector<16x256xf32>
    %cst_8 = arith.constant 1.000000e+00 : f32
    %8 = vector.broadcast %cst_8 : f32 to vector<16x256xf32>
    %9 = arith.addf %8, %7 : vector<16x256xf32>
    %10 = arith.divf %8, %9 : vector<16x256xf32>
    %11 = arith.mulf %5, %10 : vector<16x256xf32>
    %12 = arith.mulf %4, %11 : vector<16x256xf32>
    %cst_9 = arith.constant dense<0.000000e+00> : vector<16x128xf32>
    %13 = tpu.matmul %12, %3, %cst_9 {dimension_numbers = #tpu.dot_dimension_numbers<[1], [0], [0], [1], [0, 0, 1, 1], [], []>} : vector<16x256xf32>, vector<256x128xf32>, vector<16x128xf32> -> vector<16x128xf32>
    %c0_i32 = arith.constant 0 : i32
    %14 = arith.cmpi eq, %arg1, %c0_i32 : i32
    %15 = arith.extui %14 : i1 to i32
    %c0_i32_10 = arith.constant 0 : i32
    %16 = arith.cmpi ne, %15, %c0_i32_10 : i32
    scf.if %16 {
      %c0_14 = arith.constant 0 : index
      %c0_15 = arith.constant 0 : index
      %23 = vector.load %arg7[%c0_14, %c0_15] : memref<16x128xf32, #tpu.memory_space<vmem>>, vector<16x128xf32>
      tpu.vector_store %arg7[%c0_14, %c0_15], %13 {strides = array<i32>} : memref<16x128xf32, #tpu.memory_space<vmem>>, vector<16x128xf32>,
    } else {
    }
    %c0_i32_11 = arith.constant 0 : i32
    %17 = arith.cmpi sgt, %arg1, %c0_i32_11 : i32
    %18 = arith.extui %17 : i1 to i32
    %c0_i32_12 = arith.constant 0 : i32
    %19 = arith.cmpi ne, %18, %c0_i32_12 : i32
    scf.if %19 {
      %c0_14 = arith.constant 0 : index
      %c0_15 = arith.constant 0 : index
      %23 = vector.load %arg7[%c0_14, %c0_15] : memref<16x128xf32, #tpu.memory_space<vmem>>, vector<16x128xf32>
      %24 = arith.addf %23, %13 : vector<16x128xf32>
      %c0_16 = arith.constant 0 : index
      %c0_17 = arith.constant 0 : index
      %25 = vector.load %arg7[%c0_16, %c0_17] : memref<16x128xf32, #tpu.memory_space<vmem>>, vector<16x128xf32>
      tpu.vector_store %arg7[%c0_16, %c0_17], %24 {strides = array<i32>} : memref<16x128xf32, #tpu.memory_space<vmem>>, vector<16x128xf32>,
    } else {
    }
    %c1_i32 = arith.constant 1 : i32
    %20 = arith.cmpi eq, %arg1, %c1_i32 : i32
    %21 = arith.extui %20 : i1 to i32
    %c0_i32_13 = arith.constant 0 : i32
    %22 = arith.cmpi ne, %21, %c0_i32_13 : i32
    scf.if %22 {
      %c0_14 = arith.constant 0 : index
      %c0_15 = arith.constant 0 : index
      %23 = vector.load %arg7[%c0_14, %c0_15] : memref<16x128xf32, #tpu.memory_space<vmem>>, vector<16x128xf32>
      %c0_16 = arith.constant 0 : index
      %c0_17 = arith.constant 0 : index
      %24 = vector.load %arg6[%c0_16, %c0_17] : memref<16x128xf32, #tpu.memory_space<vmem>>, vector<16x128xf32>
      tpu.vector_store %arg6[%c0_16, %c0_17], %23 {strides = array<i32>} : memref<16x128xf32, #tpu.memory_space<vmem>>, vector<16x128xf32>,
    } else {
    }
    return
  }
  func.func @transform_0(%arg0: i32, %arg1: i32) -> (i32, i32) {
    %c0_i32 = arith.constant 0 : i32
    %c0_i32_0 = arith.constant 0 : i32
    return %arg0, %c0_i32 : i32, i32
  }
  func.func @transform_1(%arg0: i32, %arg1: i32) -> (i32, i32) {
    %c0_i32 = arith.constant 0 : i32
    %c0_i32_0 = arith.constant 0 : i32
    return %arg1, %c0_i32 : i32, i32
  }
  func.func @transform_2(%arg0: i32, %arg1: i32) -> (i32, i32) {
    %c0_i32 = arith.constant 0 : i32
    %c0_i32_0 = arith.constant 0 : i32
    return %arg1, %c0_i32 : i32, i32
  }
  func.func @transform_3(%arg0: i32, %arg1: i32) -> (i32, i32) {
    %c0_i32 = arith.constant 0 : i32
    %c0_i32_0 = arith.constant 0 : i32
    return %arg1, %c0_i32 : i32, i32
  }
  func.func @transform_4(%arg0: i32, %arg1: i32) -> (i32, i32) {
    %c0_i32 = arith.constant 0 : i32
    %c0_i32_0 = arith.constant 0 : i32
    return %arg0, %c0_i32 : i32, i32
  }
}

</mosaic_0001>

<bundles_post_ra>
// kernel: mlp_pallas.1
= control target key start
LH: loop header
LB: loop body
LE: loop exit
PB: predicated region body
PF: predicated region fallthrough
CT: control target
= control target key end

     0   :  { %s1505_s0 = inlined_call_operand.hbm [shape: f32[16,128], index: 0, kind: input, shape index: {}]   ;;  %s1506_s1 = inlined_call_operand.hbm [shape: f32[512,128], index: 1, kind: input, shape index: {}]   ;;  %s1507_s2 = inlined_call_operand.hbm [shape: f32[512,128], index: 2, kind: input, shape index: {}]   ;;  %s1508_s3 = inlined_call_operand.hbm [shape: f32[512,128], index: 3, kind: input, shape index: {}]   ;;  %s1509_s4 = inlined_call_operand.hbm [shape: f32[16,128], index: 4, kind: output, shape index: {}]  }
   0x1   :  { %1511 = sst [smem:[#allocation16_spill]] %s1505_s0 }
   0x2   :  { %1512 = sst [smem:[#allocation17_spill]] %s1506_s1 }
   0x3   :  { %9 = vsyncpa [#allocation4], 0 }
   0x4   :  { %10 = vsyncpa [#allocation7], 0 }
   0x5   :  { %12 = vsyncpa [#allocation7 + $0x1], 0 }
   0x6   :  { %13 = vsyncpa [#allocation10], 0 }
   0x7   :  { %15 = vsyncpa [#allocation10 + $0x1], 0 }
   0x8   :  { %16 = vsyncpa [#allocation5], 0  ;;  %s1220_s15 = smov 0   ;;  %s1222_s16 = smov 0  }
   0x9   :  { %s1224_s17 = smov 0   ;;  %s1226_s18 = smov 0  }
   0xa   :  { %s1228_s19 = smov 0   ;;  %s1230_s20 = smov 0  }
   0xb LB: > { %s31_s21 = sadd.s32 1, %s1183_s19  ;;  %s67_s22 = sadd.s32 1, %s1175_s17  ;;  %s1187_s20 = sphi %s1230_s20, %s22_s20   ;;  %s1183_s19 = sphi %s1228_s19, %s1524_s19   ;;  %s1179_s18 = sphi %s1226_s18, %s1523_s18   ;;  %s1175_s17 = sphi %s1224_s17, %s1522_s17   ;;  %s1171_s16 = sphi %s1222_s16, %s1521_s16   ;;  %s1167_s15 = sphi %s1220_s15, %s1520_s15  }
   0xc   : > { %p32_p0 = scmp.ge.s32.totalorder %s31_s21, 2  ;;  %p74_p1 = scmp.ne.s32.totalorder %s1175_s17, %s1171_s16 }
   0xd   : > { %p75_p2 = scmp.eq.s32.totalorder %s1187_s20, 0  ;;  %p903_p5 = scmp.lt.s32.totalorder %s1187_s20, 2 }
   0xe   : > { %s1526_s21 = smov (%p32_p0, %s31_s21), 0  ;;  %s199_s25 = sand.u32 1, %s1187_s20  }
   0xf   : > { %p1257_p3 = por %p75_p2, %p74_p1  ;;  %s64_s24 = ssub.s32 %s1183_s19, %s1526_s21 }
  0x10   : > { %p65_p4 = scmp.eq.s32.totalorder %s64_s24, 0  ;;  %s1510_s26 = sand.u32 1, %s1175_s17  }
  0x11   : > { %s1271_s28 = sshll.u32 %s1510_s26, 8  ;;  %s1274_s29 = sshll.u32 %s1183_s19, 8 }
  0x12   : > { %s1267_s27 = scalar_select %p65_p4, %s1175_s17, %s67_s22  }
  0x13   : > { %s1514_s1 = sld [smem:[#allocation17_spill]]  ;;  %s203_s7 = scalar_lea.vmem [#allocation6], %s1271_s28 }
  0x14   : > { %s211_s8 = sshll.u32 %s203_s7, 4  ;;  %p1283_p6 = pnand %p903_p5, %p1257_p3  ;;  %s212_s8 = int_to_ptr.vmem [resolvable:$true] %s211_s8 }
  0x15   : > { %s1287_s11 = scalar_lea.sflag [#allocation7], %s199_s25  ;;  %s1189_s12 = smov 128  }
  0x16   : > { %s1190_s13 = smov 8   ;;  %s1296_s14 = sadd.s32 4294967295, %s1187_s20  }
  0x17   : > { %p80_p7 = scmp.ne.s32.totalorder %s1171_s16, %s1167_s15  ;;  %p81_p8 = scmp.eq.s32.totalorder %s1296_s14, 0 }
  0x18   : > { %p811_p9 = scmp.ge.s32.totalorder %s1187_s20, 1  ;;  %p169_p10 = scmp.lt.s32.totalorder %s1187_s20, 3 }
  0x19   : > { %s208_s6 = scalar_lea.hbm %s1514_s1, %s1274_s29  ;;  %p1305_p11 = por %p81_p8, %p80_p7 }
  0x1a   : > { %s209_s9 = sshll.u32 %s208_s6, 4  ;;  %p1309_p12 = pnand %p811_p9, %p169_p10  ;;  %s210_s9 = int_to_ptr.hbm [resolvable:$true] %s209_s9 }
  0x1b   : > { %895 = dma.hbm_to_vmem [thread:$0]  (!%p1283_p6), %s210_s9, 4096, %s212_s8, %s1287_s11, %s1189_s12, %s1189_s12, %s1190_s13  }
  0x1c   : > { %s1518_s0 = sld [smem:[#allocation16_spill]]  ;;  %p888_p13 = pneg %p1309_p12 }
  0x1d   : > { %s1191_s30 = smov [#allocation3]   ;;  %s230_s8 = scalar_lea.hbm %s1507_s2, %s1274_s29 }
  0x1e   : > { %s185_s5 = sshll.u32 %s1191_s30, 4  ;;  %p889_p0 = pnand %p888_p13, %p81_p8  ;;  %s186_s5 = int_to_ptr.vmem [resolvable:$true] %s185_s5 }
  0x1f   : > { %s231_s9 = sshll.u32 %s230_s8, 4  ;;  %s225_s24 = scalar_lea.vmem [#allocation8], %s1271_s28  ;;  %s232_s9 = int_to_ptr.hbm [resolvable:$true] %s231_s9 }
  0x20   : > { %s233_s25 = sshll.u32 %s225_s24, 4  ;;  %s252_s6 = scalar_lea.hbm %s1508_s3, %s1274_s29  ;;  %s234_s25 = int_to_ptr.vmem [resolvable:$true] %s233_s25 }
  0x21   : > { %898 = dma.hbm_to_vmem [thread:$0]  (!%p1283_p6), %s232_s9, 4096, %s234_s25, %s1287_s11, %s1189_s12, %s1189_s12, %s1190_s13  }
  0x22   : > { %s183_s15 = sshll.u32 %s1518_s0, 4  ;;  %s253_s7 = sshll.u32 %s252_s6, 4  ;;  %s184_s15 = int_to_ptr.hbm [resolvable:$true] %s183_s15  ;;  %s254_s7 = int_to_ptr.hbm [resolvable:$true] %s253_s7 }
  0x23   : > { %891 = dma.hbm_to_vmem [thread:$0]  (!%p889_p0), %s184_s15, 256, %s186_s5, [#allocation4], %s1189_s12, %s1189_s12, %s1190_s13  }
  0x24   : > { %s247_s0 = scalar_lea.vmem [#allocation9], %s1271_s28  ;;  %s1519_s24 = sand.u32 1, %s1175_s17  }
  0x25   : > { %s255_s8 = sshll.u32 %s247_s0, 4  ;;  %s244_s1 = scalar_lea.sflag [#allocation10], %s1519_s24  ;;  %s256_s8 = int_to_ptr.vmem [resolvable:$true] %s255_s8 }
  0x26   : > { %901 = dma.hbm_to_vmem [thread:$0]  (!%p1283_p6), %s254_s7, 4096, %s256_s8, %s244_s1, %s1189_s12, %s1189_s12, %s1190_s13  }
  0x27   : > { %267 = sbr.rel (%p1309_p12) target bundleno = 454 (0x1c6), region = 36 }
  0x2c   : > { %1150 = dma.done.wait (%p81_p8), [#allocation4], 256  }
  0x2d   : > { %1152 = vsyncadd (%p81_p8), [#allocation4], 4294967040  ;;  %s274_s0 = sand.u32 1, %s1296_s14   ;;  %s276_s26 = sand.u32 1, %s1171_s16  }
  0x2e   : > { %s825_s28 = sshll.u32 %s276_s26, 8  ;;  %s275_s29 = scalar_lea.sflag [#allocation7], %s274_s0 }
  0x2f   : > { %s1354_s10 = scalar_lea.vmem [#allocation6], %s825_s28 }
  0x30   : > { %1154 = dma.done.wait (%p1305_p11), %s275_s29, 8192  }
  0x31   : > { %1156 = vsyncadd (%p1305_p11), %s275_s29, 4294959104  ;;  %s1360_s1 = scalar_lea.vmem [#allocation8], %s825_s28  ;;  %s295_s11 = scalar_lea.sflag [#allocation10], %s276_s26 }
  0x32   : > { %s1362_s12 = scalar_lea.vmem [#allocation9], %s825_s28 }
  0x33   : > { %1158 = dma.done.wait (%p1305_p11), %s295_s11, 4096  }
  0x34   : > { %1160 = vsyncadd (%p1305_p11), %s295_s11, 4294963200  ;;  %v383_v0 = vld [vmem:[%s1360_s1 + $0x78] sm:$0xff]  ;;  %v382_v2 = vld [vmem:[%s1360_s1 + $0x70] sm:$0xff]  ;;  %p832_p1 = scmp.ne.s32.totalorder %s1179_s18, 0 }
  0x35   : > { %v399_v1 = vld [vmem:[%s1360_s1 + $0xf8] sm:$0xff]  ;;  %478 = vmatpush.xpose.msra.mxu2 %v383_v0  ;;  %v398_v3 = vld [vmem:[%s1360_s1 + $0xf0] sm:$0xff]  ;;  %v381_v4 = vld [vmem:[%s1360_s1 + $0x68] sm:$0xff] }
  0x36   : > { %501 = vmatpush.xpose.msra.mxu3 %v399_v1  ;;  %v397_v5 = vld [vmem:[%s1360_s1 + $0xe8] sm:$0xff]  ;;  %v351_v6 = vld [vmem:[%s1354_s10 + $0x78] sm:$0xff]  ;;  %v350_v8 = vld [vmem:[%s1354_s10 + $0x70] sm:$0xff] }
  0x37   : > { %v367_v7 = vld [vmem:[%s1354_s10 + $0xf8] sm:$0xff]  ;;  %432 = vmatpush.xpose.msra.mxu0 %v351_v6  ;;  %v366_v9 = vld [vmem:[%s1354_s10 + $0xf0] sm:$0xff]  ;;  %v380_v10 = vld [vmem:[%s1360_s1 + $0x60] sm:$0xff] }
  0x38   : > { %455 = vmatpush.xpose.msra.mxu1 %v367_v7  ;;  %v396_v11 = vld [vmem:[%s1360_s1 + $0xe0] sm:$0xff]  ;;  %v349_v12 = vld [vmem:[%s1354_s10 + $0x68] sm:$0xff]  ;;  %v379_v14 = vld [vmem:[%s1360_s1 + $0x58] sm:$0xff] }
  0x39   : > { %479 = vmatpush.xpose.msra.mxu2 %v382_v2  ;;  %v365_v13 = vld [vmem:[%s1354_s10 + $0xe8] sm:$0xff]  ;;  %v395_v15 = vld [vmem:[%s1360_s1 + $0xd8] sm:$0xff]  ;;  %v348_v16 = vld [vmem:[%s1354_s10 + $0x60] sm:$0xff] }
  0x3a   : > { %502 = vmatpush.xpose.msra.mxu3 %v398_v3  ;;  %v364_v17 = vld [vmem:[%s1354_s10 + $0xe0] sm:$0xff]  ;;  %v378_v18 = vld [vmem:[%s1360_s1 + $0x50] sm:$0xff]  ;;  %v347_v20 = vld [vmem:[%s1354_s10 + $0x58] sm:$0xff] }
  0x3b   : > { %433 = vmatpush.xpose.msra.mxu0 %v350_v8  ;;  %v394_v19 = vld [vmem:[%s1360_s1 + $0xd0] sm:$0xff]  ;;  %v363_v21 = vld [vmem:[%s1354_s10 + $0xd8] sm:$0xff]  ;;  %v377_v22 = vld [vmem:[%s1360_s1 + $0x48] sm:$0xff] }
  0x3c   : > { %456 = vmatpush.xpose.msra.mxu1 %v366_v9  ;;  %v393_v23 = vld [vmem:[%s1360_s1 + $0xc8] sm:$0xff]  ;;  %v346_v24 = vld [vmem:[%s1354_s10 + $0x50] sm:$0xff]  ;;  %v376_v26 = vld [vmem:[%s1360_s1 + $0x40] sm:$0xff] }
  0x3d   : > { %480 = vmatpush.xpose.msra.mxu2 %v381_v4  ;;  %v362_v25 = vld [vmem:[%s1354_s10 + $0xd0] sm:$0xff]  ;;  %v392_v27 = vld [vmem:[%s1360_s1 + $0xc0] sm:$0xff]  ;;  %v345_v28 = vld [vmem:[%s1354_s10 + $0x48] sm:$0xff] }
  0x3e   : > { %503 = vmatpush.xpose.msra.mxu3 %v397_v5  ;;  %v361_v29 = vld [vmem:[%s1354_s10 + $0xc8] sm:$0xff]  ;;  %v375_v30 = vld [vmem:[%s1360_s1 + $0x38] sm:$0xff]  ;;  %v344_v32 = vld [vmem:[%s1354_s10 + $0x40] sm:$0xff] }
  0x3f   : > { %434 = vmatpush.xpose.msra.mxu0 %v349_v12  ;;  %v391_v31 = vld [vmem:[%s1360_s1 + $0xb8] sm:$0xff]  ;;  %v360_v33 = vld [vmem:[%s1354_s10 + $0xc0] sm:$0xff]  ;;  %v374_v34 = vld [vmem:[%s1360_s1 + $0x30] sm:$0xff] }
  0x40   : > { %457 = vmatpush.xpose.msra.mxu1 %v365_v13  ;;  %v390_v35 = vld [vmem:[%s1360_s1 + $0xb0] sm:$0xff]  ;;  %v343_v36 = vld [vmem:[%s1354_s10 + $0x38] sm:$0xff]  ;;  %v373_v38 = vld [vmem:[%s1360_s1 + $0x28] sm:$0xff] }
  0x41   : > { %481 = vmatpush.xpose.msra.mxu2 %v380_v10  ;;  %v359_v37 = vld [vmem:[%s1354_s10 + $0xb8] sm:$0xff]  ;;  %v389_v39 = vld [vmem:[%s1360_s1 + $0xa8] sm:$0xff]  ;;  %v342_v40 = vld [vmem:[%s1354_s10 + $0x30] sm:$0xff] }
  0x42   : > { %504 = vmatpush.xpose.msra.mxu3 %v396_v11  ;;  %v358_v41 = vld [vmem:[%s1354_s10 + $0xb0] sm:$0xff]  ;;  %v372_v42 = vld [vmem:[%s1360_s1 + $0x20] sm:$0xff]  ;;  %v341_v44 = vld [vmem:[%s1354_s10 + $0x28] sm:$0xff] }
  0x43   : > { %435 = vmatpush.xpose.msra.mxu0 %v348_v16  ;;  %v388_v43 = vld [vmem:[%s1360_s1 + $0xa0] sm:$0xff]  ;;  %v357_v45 = vld [vmem:[%s1354_s10 + $0xa8] sm:$0xff]  ;;  %v371_v46 = vld [vmem:[%s1360_s1 + $0x18] sm:$0xff] }
  0x44   : > { %458 = vmatpush.xpose.msra.mxu1 %v364_v17  ;;  %v387_v47 = vld [vmem:[%s1360_s1 + $0x98] sm:$0xff]  ;;  %v340_v48 = vld [vmem:[%s1354_s10 + $0x20] sm:$0xff]  ;;  %v370_v50 = vld [vmem:[%s1360_s1 + $0x10] sm:$0xff] }
  0x45   : > { %482 = vmatpush.xpose.msra.mxu2 %v379_v14  ;;  %v356_v49 = vld [vmem:[%s1354_s10 + $0xa0] sm:$0xff]  ;;  %v386_v51 = vld [vmem:[%s1360_s1 + $0x90] sm:$0xff]  ;;  %v339_v52 = vld [vmem:[%s1354_s10 + $0x18] sm:$0xff] }
  0x46   : > { %505 = vmatpush.xpose.msra.mxu3 %v395_v15  ;;  %v355_v53 = vld [vmem:[%s1354_s10 + $0x98] sm:$0xff]  ;;  %v369_v54 = vld [vmem:[%s1360_s1 + $0x8] sm:$0xff]  ;;  %v338_v56 = vld [vmem:[%s1354_s10 + $0x10] sm:$0xff] }
  0x47   : > { %436 = vmatpush.xpose.msra.mxu0 %v347_v20  ;;  %v385_v55 = vld [vmem:[%s1360_s1 + $0x88] sm:$0xff]  ;;  %v354_v57 = vld [vmem:[%s1354_s10 + $0x90] sm:$0xff]  ;;  %v368_v58 = vld [vmem:[%s1360_s1] sm:$0xff] }
  0x48   : > { %459 = vmatpush.xpose.msra.mxu1 %v363_v21  ;;  %v384_v59 = vld [vmem:[%s1360_s1 + $0x80] sm:$0xff]  ;;  %v337_v60 = vld [vmem:[%s1354_s10 + $0x8] sm:$0xff]  ;;  %v334_v62 = vld [vmem:[#allocation3] sm:$0xff] }
  0x49   : > { %483 = vmatpush.xpose.msra.mxu2 %v378_v18  ;;  %v353_v61 = vld [vmem:[%s1354_s10 + $0x88] sm:$0xff]  ;;  %v336_v63 = vld [vmem:[%s1354_s10] sm:$0xff]  ;;  %v335_v1 = vld [vmem:[#allocation3 + $0x8] sm:$0xff] }
  0x4a   : > { %506 = vmatpush.xpose.msra.mxu3 %v394_v19  ;;  %v352_v0 = vld [vmem:[%s1354_s10 + $0x80] sm:$0xff]  ;;  %v415_v2 = vld [vmem:[%s1362_s12 + $0x78] sm:$0xff]  ;;  %v414_v4 = vld [vmem:[%s1362_s12 + $0x70] sm:$0xff] }
  0x4b   : > { %437 = vmatpush.xpose.msra.mxu0 %v346_v24  ;;  %v431_v3 = vld [vmem:[%s1362_s12 + $0xf8] sm:$0xff]  ;;  %v430_v5 = vld [vmem:[%s1362_s12 + $0xf0] sm:$0xff]  ;;  %v413_v6 = vld [vmem:[%s1362_s12 + $0x68] sm:$0xff] }
  0x4c   : > { %460 = vmatpush.xpose.msra.mxu1 %v362_v25  ;;  %v429_v7 = vld [vmem:[%s1362_s12 + $0xe8] sm:$0xff]  ;;  %v412_v8 = vld [vmem:[%s1362_s12 + $0x60] sm:$0xff]  ;;  %v411_v10 = vld [vmem:[%s1362_s12 + $0x58] sm:$0xff] }
  0x4d   : > { %484 = vmatpush.xpose.msra.mxu2 %v377_v22  ;;  %v428_v9 = vld [vmem:[%s1362_s12 + $0xe0] sm:$0xff]  ;;  %v427_v11 = vld [vmem:[%s1362_s12 + $0xd8] sm:$0xff]  ;;  %v410_v12 = vld [vmem:[%s1362_s12 + $0x50] sm:$0xff] }
  0x4e   : > { %507 = vmatpush.xpose.msra.mxu3 %v393_v23  ;;  %v426_v13 = vld [vmem:[%s1362_s12 + $0xd0] sm:$0xff]  ;;  %v409_v14 = vld [vmem:[%s1362_s12 + $0x48] sm:$0xff]  ;;  %v408_v16 = vld [vmem:[%s1362_s12 + $0x40] sm:$0xff] }
  0x4f   : > { %438 = vmatpush.xpose.msra.mxu0 %v345_v28  ;;  %v425_v15 = vld [vmem:[%s1362_s12 + $0xc8] sm:$0xff]  ;;  %v424_v17 = vld [vmem:[%s1362_s12 + $0xc0] sm:$0xff]  ;;  %v407_v18 = vld [vmem:[%s1362_s12 + $0x38] sm:$0xff] }
  0x50   : > { %461 = vmatpush.xpose.msra.mxu1 %v361_v29  ;;  %v423_v19 = vld [vmem:[%s1362_s12 + $0xb8] sm:$0xff]  ;;  %v406_v20 = vld [vmem:[%s1362_s12 + $0x30] sm:$0xff]  ;;  %v405_v22 = vld [vmem:[%s1362_s12 + $0x28] sm:$0xff] }
  0x51   : > { %485 = vmatpush.xpose.msra.mxu2 %v376_v26  ;;  %v422_v21 = vld [vmem:[%s1362_s12 + $0xb0] sm:$0xff]  ;;  %v421_v23 = vld [vmem:[%s1362_s12 + $0xa8] sm:$0xff]  ;;  %v404_v24 = vld [vmem:[%s1362_s12 + $0x20] sm:$0xff] }
  0x52   : > { %508 = vmatpush.xpose.msra.mxu3 %v392_v27  ;;  %v420_v25 = vld [vmem:[%s1362_s12 + $0xa0] sm:$0xff]  ;;  %v403_v26 = vld [vmem:[%s1362_s12 + $0x18] sm:$0xff]  ;;  %v402_v28 = vld [vmem:[%s1362_s12 + $0x10] sm:$0xff] }
  0x53   : > { %439 = vmatpush.xpose.msra.mxu0 %v344_v32  ;;  %v419_v27 = vld [vmem:[%s1362_s12 + $0x98] sm:$0xff]  ;;  %v418_v29 = vld [vmem:[%s1362_s12 + $0x90] sm:$0xff] }
  0x54   : > { %462 = vmatpush.xpose.msra.mxu1 %v360_v33 }
  0x55   : > { %486 = vmatpush.xpose.msra.mxu2 %v375_v30 }
  0x56   : > { %509 = vmatpush.xpose.msra.mxu3 %v391_v31 }
  0x57   : > { %440 = vmatpush.xpose.msra.mxu0 %v343_v36  ;;  %v400_v36 = vld [vmem:[%s1362_s12] sm:$0xff] }
  0x58   : > { %463 = vmatpush.xpose.msra.mxu1 %v359_v37  ;;  %v416_v37 = vld [vmem:[%s1362_s12 + $0x80] sm:$0xff] }
  0x59   : > { %487 = vmatpush.xpose.msra.mxu2 %v374_v34  ;;  %v401_v34 = vld [vmem:[%s1362_s12 + $0x8] sm:$0xff] }
  0x5a   : > { %510 = vmatpush.xpose.msra.mxu3 %v390_v35  ;;  %v417_v35 = vld [vmem:[%s1362_s12 + $0x88] sm:$0xff] }
  0x5b   : > { %441 = vmatpush.xpose.msra.mxu0 %v342_v40 }
  0x5c   : > { %464 = vmatpush.xpose.msra.mxu1 %v358_v41 }
  0x5d   : > { %488 = vmatpush.xpose.msra.mxu2 %v373_v38 }
  0x5e   : > { %511 = vmatpush.xpose.msra.mxu3 %v389_v39 }
  0x5f   : > { %442 = vmatpush.xpose.msra.mxu0 %v341_v44 }
  0x60   : > { %465 = vmatpush.xpose.msra.mxu1 %v357_v45 }
  0x61   : > { %489 = vmatpush.xpose.msra.mxu2 %v372_v42 }
  0x62   : > { %512 = vmatpush.xpose.msra.mxu3 %v388_v43 }
  0x63   : > { %443 = vmatpush.xpose.msra.mxu0 %v340_v48 }
  0x64   : > { %466 = vmatpush.xpose.msra.mxu1 %v356_v49 }
  0x65   : > { %490 = vmatpush.xpose.msra.mxu2 %v371_v46 }
  0x66   : > { %513 = vmatpush.xpose.msra.mxu3 %v387_v47 }
  0x67   : > { %444 = vmatpush.xpose.msra.mxu0 %v339_v52 }
  0x68   : > { %467 = vmatpush.xpose.msra.mxu1 %v355_v53 }
  0x69   : > { %491 = vmatpush.xpose.msra.mxu2 %v370_v50 }
  0x6a   : > { %514 = vmatpush.xpose.msra.mxu3 %v386_v51 }
  0x6b   : > { %445 = vmatpush.xpose.msra.mxu0 %v338_v56 }
  0x6c   : > { %468 = vmatpush.xpose.msra.mxu1 %v354_v57 }
  0x6d   : > { %492 = vmatpush.xpose.msra.mxu2 %v369_v54 }
  0x6e   : > { %515 = vmatpush.xpose.msra.mxu3 %v385_v55 }
  0x6f   : > { %446 = vmatpush.xpose.msra.mxu0 %v337_v60 }
  0x70   : > { %469 = vmatpush.xpose.msra.mxu1 %v353_v61 }
  0x71   : > { %493 = vmatpush.xpose.msra.mxu2 %v368_v58 }
  0x72   : > { %516 = vmatpush.xpose.msra.mxu3 %v384_v59 }
  0x73   : > { %447 = vmatpush.xpose.msra.mxu0 %v336_v63 }
  0x74   : > { %494 = vmatmul.f32.vlgmr.msra.gmra.mxu2 %v334_v62  ;;  %470 = vmatpush.xpose.msra.mxu1 %v352_v0 }
  0x75   : > { %517 = vmatmul.f32.vlgmr.msra.gmra.mxu3 %v334_v62  ;;  %842 = vmatpush.msrb.mxu2 %v415_v2 }
  0x76   : > { %448 = vmatmul.f32.vlgmr.msra.gmra.mxu0 %v334_v62  ;;  %858 = vmatpush.msrb.mxu3 %v431_v3 }
  0x77   : > { %471 = vmatmul.f32.vlgmr.msra.gmra.mxu1 %v334_v62  ;;  %608 = vmatpush.msrb.mxu0 %v415_v2 }
  0x78   : > { %631 = vmatpush.msrb.mxu1 %v431_v3  ;;  %843 = vmatpush.msrb.mxu2 %v414_v4 }
  0x79   : > { %609 = vmatpush.msrb.mxu0 %v414_v4  ;;  %859 = vmatpush.msrb.mxu3 %v430_v5 }
  0x7a   : > { %632 = vmatpush.msrb.mxu1 %v430_v5  ;;  %844 = vmatpush.msrb.mxu2 %v413_v6 }
  0x7b   : > { %610 = vmatpush.msrb.mxu0 %v413_v6  ;;  %860 = vmatpush.msrb.mxu3 %v429_v7 }
  0x7c   : > { %497 = vmatmul.f32.gmra.mxu2 %v335_v1  ;;  %633 = vmatpush.msrb.mxu1 %v429_v7 }
  0x7d   : > { %520 = vmatmul.f32.gmra.mxu3 %v335_v1  ;;  %611 = vmatpush.msrb.mxu0 %v412_v8 }
  0x7e   : > { %451 = vmatmul.f32.gmra.mxu0 %v335_v1  ;;  %634 = vmatpush.msrb.mxu1 %v428_v9 }
  0x7f   : > { %474 = vmatmul.f32.gmra.mxu1 %v335_v1  ;;  %845 = vmatpush.msrb.mxu2 %v412_v8 }
  0x80   : > { %861 = vmatpush.msrb.mxu3 %v428_v9  ;;  %612 = vmatpush.msrb.mxu0 %v411_v10 }
  0x81   : > { %635 = vmatpush.msrb.mxu1 %v427_v11  ;;  %846 = vmatpush.msrb.mxu2 %v411_v10 }
  0x82   : > { %862 = vmatpush.msrb.mxu3 %v427_v11  ;;  %613 = vmatpush.msrb.mxu0 %v410_v12 }
  0x83   : > { %636 = vmatpush.msrb.mxu1 %v426_v13  ;;  %847 = vmatpush.msrb.mxu2 %v410_v12 }
  0x84   : > { %863 = vmatpush.msrb.mxu3 %v426_v13  ;;  %614 = vmatpush.msrb.mxu0 %v409_v14 }
  0x85   : > { %637 = vmatpush.msrb.mxu1 %v425_v15  ;;  %848 = vmatpush.msrb.mxu2 %v409_v14 }
  0x86   : > { %864 = vmatpush.msrb.mxu3 %v425_v15  ;;  %615 = vmatpush.msrb.mxu0 %v408_v16 }
  0x87   : > { %638 = vmatpush.msrb.mxu1 %v424_v17  ;;  %849 = vmatpush.msrb.mxu2 %v408_v16 }
  0x88   : > { %865 = vmatpush.msrb.mxu3 %v424_v17  ;;  %616 = vmatpush.msrb.mxu0 %v407_v18 }
  0x89   : > { %639 = vmatpush.msrb.mxu1 %v423_v19  ;;  %850 = vmatpush.msrb.mxu2 %v407_v18 }
  0x8a   : > { %866 = vmatpush.msrb.mxu3 %v423_v19  ;;  %617 = vmatpush.msrb.mxu0 %v406_v20 }
  0x8b   : > { %640 = vmatpush.msrb.mxu1 %v422_v21  ;;  %851 = vmatpush.msrb.mxu2 %v406_v20 }
  0x8c   : > { %867 = vmatpush.msrb.mxu3 %v422_v21  ;;  %618 = vmatpush.msrb.mxu0 %v405_v22 }
  0x8d   : > { %641 = vmatpush.msrb.mxu1 %v421_v23  ;;  %852 = vmatpush.msrb.mxu2 %v405_v22 }
  0x8e   : > { %868 = vmatpush.msrb.mxu3 %v421_v23  ;;  %619 = vmatpush.msrb.mxu0 %v404_v24 }
  0x8f   : > { %642 = vmatpush.msrb.mxu1 %v420_v25  ;;  %853 = vmatpush.msrb.mxu2 %v404_v24 }
  0x90   : > { %869 = vmatpush.msrb.mxu3 %v420_v25  ;;  %620 = vmatpush.msrb.mxu0 %v403_v26 }
  0x91   : > { %643 = vmatpush.msrb.mxu1 %v419_v27  ;;  %854 = vmatpush.msrb.mxu2 %v403_v26 }
  0x92   : > { %870 = vmatpush.msrb.mxu3 %v419_v27  ;;  %621 = vmatpush.msrb.mxu0 %v402_v28 }
  0x93   : > { %644 = vmatpush.msrb.mxu1 %v418_v29  ;;  %855 = vmatpush.msrb.mxu2 %v402_v28 }
  0x94   : > { %871 = vmatpush.msrb.mxu3 %v418_v29  ;;  %622 = vmatpush.msrb.mxu0 %v401_v34 }
  0x95   : > { %645 = vmatpush.msrb.mxu1 %v417_v35  ;;  %856 = vmatpush.msrb.mxu2 %v401_v34 }
  0x96   : > { %872 = vmatpush.msrb.mxu3 %v417_v35  ;;  %623 = vmatpush.msrb.mxu0 %v400_v36 }
  0x97   : > { %646 = vmatpush.msrb.mxu1 %v416_v37  ;;  %857 = vmatpush.msrb.mxu2 %v400_v36 }
  0x98   : > { %873 = vmatpush.msrb.mxu3 %v416_v37 }
  0xf3   : > { %v449_v2 = vpop.f32.mrf.mxu0 }
  0xf4   : > { %v472_v12 = vpop.f32.mrf.mxu1 }
  0xf7   : > { %v1460_v30 = vpop.f32.mrf.mxu2 }
  0xf8   : > { %v1462_v31 = vpop.f32.mrf.mxu3  ;;  %v828_v32 = vmul.f32 -1.442695, %v1460_v30 }
  0xf9   : > { %v829_v33 = vmul.f32 -1.442695, %v1462_v31 }
  0xfa   : > { %961 = vpow2.f32 %v828_v32 }
  0xfb   : > { %963 = vpow2.f32 %v829_v33  ;;  %v452_v29 = vpop.f32.mrf.mxu0 }
  0xfc   : > { %v475_v35 = vpop.f32.mrf.mxu1 }
  0xff   : > { %v1470_v38 = vpop.f32.mrf.mxu2 }
 0x100   : > { %v1472_v39 = vpop.f32.mrf.mxu3  ;;  %v962_v40 = vpop.eup %961  ;;  %v830_v41 = vmul.f32 -1.442695, %v1470_v38 }
 0x101   : > { %v964_v42 = vpop.eup %963  ;;  %v536_v43 = vadd.f32 1.0, %v962_v40  ;;  %v831_v44 = vmul.f32 -1.442695, %v1472_v39 }
 0x102   : > { %v537_v45 = vadd.f32 1.0, %v964_v42  ;;  %965 = vpow2.f32 %v830_v41 }
 0x103   : > { %967 = vrcp.f32 %v536_v43  ;;  %v549_v55 = vand.u32 2147483647, %v536_v43  ;;  %v551_v56 = vand.u32 2147483648, %v536_v43  ;;  %vm545_vm2 = vweird.f32 %v536_v43 }
 0x104   : > { %969 = vrcp.f32 %v537_v45  ;;  %v566_v59 = vand.u32 2147483648, %v537_v45  ;;  %v564_v61 = vand.u32 2147483647, %v537_v45  ;;  %vm560_vm4 = vweird.f32 %v537_v45 }
 0x105   : > { %971 = vpow2.f32 %v831_v44  ;;  %v552_v0 = vor.u32 1.1754944e-38, %v551_v56  ;;  %vm550_vm5 = vcmp.eq.f32.partialorder %v549_v55, 8.507059e+37 }
 0x106   : > { %v567_v4 = vor.u32 1.1754944e-38, %v566_v59  ;;  %vm565_vm7 = vcmp.eq.f32.partialorder %v564_v61, 8.507059e+37 }
 0x108   : > { %v966_v46 = vpop.eup %965 }
 0x109   : > { %v968_v47 = vpop.eup %967  ;;  %v538_v48 = vadd.f32 1.0, %v966_v46 }
 0x10a   : > { %v970_v49 = vpop.eup %969  ;;  %v541_v50 = vmul.f32 %v968_v47, %v536_v43  ;;  %vm546_vm0 = vweird.f32 %v968_v47 }
 0x10b   : > { %v972_v51 = vpop.eup %971  ;;  %v556_v52 = vmul.f32 %v970_v49, %v537_v45  ;;  %973 = vrcp.f32 %v538_v48  ;;  %vm561_vm1 = vweird.f32 %v970_v49  ;;  %vm547_vm3 = vmor %vm545_vm2, %vm546_vm0  ;;  %v581_v14 = vand.u32 2147483648, %v538_v48 }
 0x10c   : > { %v542_v53 = vsub.f32 1.0, %v541_v50  ;;  %v539_v54 = vadd.f32 1.0, %v972_v51  ;;  %vm562_vm6 = vmor %vm560_vm4, %vm561_vm1  ;;  %v579_v17 = vand.u32 2147483647, %v538_v48  ;;  %vm575_vm9 = vweird.f32 %v538_v48 }
 0x10d   : > { %v557_v57 = vsub.f32 1.0, %v556_v52  ;;  %v582_v23 = vor.u32 1.1754944e-38, %v581_v14 }
 0x10e   : > { %v543_v58 = vmul.f32 %v968_v47, %v542_v53  ;;  %975 = vrcp.f32 %v539_v54  ;;  %v596_v22 = vand.u32 2147483648, %v539_v54  ;;  %v594_v25 = vand.u32 2147483647, %v539_v54 }
 0x10f   : > { %v558_v60 = vmul.f32 %v970_v49, %v557_v57  ;;  %vm580_vm12 = vcmp.eq.f32.partialorder %v579_v17, 8.507059e+37  ;;  %vm590_vm13 = vweird.f32 %v539_v54 }
 0x110   : > { %v544_v62 = vadd.f32 %v968_v47, %v543_v58  ;;  %vm595_vm15 = vcmp.eq.f32.partialorder %v594_v25, 8.507059e+37 }
 0x111   : > { %v974_v63 = vpop.eup %973  ;;  %v559_v1 = vadd.f32 %v970_v49, %v558_v60 }
 0x112   : > { %v548_v3 = vsel %vm547_vm3, %v968_v47, %v544_v62  ;;  %v571_v5 = vmul.f32 %v974_v63, %v538_v48  ;;  %vm576_vm8 = vweird.f32 %v974_v63 }
 0x113   : > { %v553_v6 = vsel %vm550_vm5, %v552_v0, %v548_v3  ;;  %v563_v7 = vsel %vm562_vm6, %v970_v49, %v559_v1  ;;  %vm577_vm10 = vmor %vm575_vm9, %vm576_vm8 }
 0x114   : > { %v976_v8 = vpop.eup %975  ;;  %v600_v9 = vmul.f32 %v553_v6, %v1460_v30  ;;  %v568_v10 = vsel %vm565_vm7, %v567_v4, %v563_v7  ;;  %v572_v11 = vsub.f32 1.0, %v571_v5 }
 0x115   : > { %v601_v13 = vmul.f32 %v568_v10, %v1462_v31  ;;  %v586_v15 = vmul.f32 %v976_v8, %v539_v54  ;;  %vm591_vm11 = vweird.f32 %v976_v8  ;;  %v597_v31 = vor.u32 1.1754944e-38, %v596_v22 }
 0x116   : > { %v573_v16 = vmul.f32 %v974_v63, %v572_v11  ;;  %v604_v18 = vmul.f32 %v600_v9, %v449_v2  ;;  %vm592_vm14 = vmor %vm590_vm13, %vm591_vm11 }
 0x117   : > { %v587_v19 = vsub.f32 1.0, %v586_v15  ;;  %v605_v20 = vmul.f32 %v601_v13, %v472_v12 }
 0x118   : > { %v574_v21 = vadd.f32 %v974_v63, %v573_v16  ;;  %624 = vmatmul.f32.vlgmr.msrb.gmra.mxu0 %v604_v18 }
 0x119   : > { %v588_v24 = vmul.f32 %v976_v8, %v587_v19  ;;  %647 = vmatmul.f32.vlgmr.msrb.gmra.mxu1 %v605_v20 }
 0x11a   : > { %v578_v26 = vsel %vm577_vm10, %v974_v63, %v574_v21 }
 0x11b   : > { %v583_v27 = vsel %vm580_vm12, %v582_v23, %v578_v26  ;;  %v589_v28 = vadd.f32 %v976_v8, %v588_v24 }
 0x11c   : > { %v602_v30 = vmul.f32 %v583_v27, %v1470_v38 }
 0x11d   : > { %v593_v32 = vsel %vm592_vm14, %v976_v8, %v589_v28 }
 0x11e   : > { %v598_v33 = vsel %vm595_vm15, %v597_v31, %v593_v32  ;;  %v606_v34 = vmul.f32 %v602_v30, %v452_v29 }
 0x11f   : > { %v603_v36 = vmul.f32 %v598_v33, %v1472_v39 }
 0x120   : > { %627 = vmatmul.f32.vlgmr.msrb.gmra.mxu2 %v606_v34 }
 0x121   : > { %v607_v37 = vmul.f32 %v603_v36, %v475_v35 }
 0x123   : > { %650 = vmatmul.f32.vlgmr.msrb.gmra.mxu3 %v607_v37 }
 0x195   : > { %v625_v40 = vpop.f32.mrf.mxu0 }
 0x196   : > { %v648_v41 = vpop.f32.mrf.mxu1 }
 0x197   : > { %v649_v42 = vadd.f32 %v648_v41, %v625_v40 }
 0x1a3   : > { %v628_v43 = vpop.f32.mrf.mxu2  ;;  %657 = sbr.rel (%p832_p1) target bundleno = 426 (0x1aa), region = 56 }
 0x1a6   : > { %v651_v44 = vpop.f32.mrf.mxu3 }
 0x1a7   : > { %v652_v45 = vadd.f32 %v651_v44, %v628_v43 }
 0x1a8   : > { %658 = vst [vmem:[#allocation2] sm:$0xff] %v649_v42 }
 0x1a9   : > { %659 = vst [vmem:[#allocation2 + $0x8] sm:$0xff] %v652_v45 }
 0x1aa PF: > { %p833_p2 = scmp.le.s32.totalorder %s1179_s18, 0 }
 0x1ac   : > { %663 = sbr.rel (%p833_p2) target bundleno = 438 (0x1b6), region = 60 }
 0x1b1   : > { %v664_v38 = vld [vmem:[#allocation2] sm:$0xff]  ;;  %v665_v39 = vld [vmem:[#allocation2 + $0x8] sm:$0xff] }
 0x1b2   : > { %v666_v46 = vadd.f32 %v664_v38, %v649_v42  ;;  %v667_v47 = vadd.f32 %v665_v39, %v652_v45 }
 0x1b4   : > { %668 = vst [vmem:[#allocation2] sm:$0xff] %v666_v46 }
 0x1b5   : > { %669 = vst [vmem:[#allocation2 + $0x8] sm:$0xff] %v667_v47 }
 0x1b6 PF: > { %p834_p3 = scmp.ne.s32.totalorder %s1179_s18, 1 }
 0x1b8   : > { %673 = sbr.rel (%p834_p3) target bundleno = 448 (0x1c0), region = 64 }
 0x1bd   : > { %v674_v48 = vld [vmem:[#allocation2] sm:$0xff]  ;;  %v675_v49 = vld [vmem:[#allocation2 + $0x8] sm:$0xff] }
 0x1be   : > { %676 = vst [vmem:[#allocation11] sm:$0xff] %v674_v48 }
 0x1bf   : > { %677 = vst [vmem:[#allocation11 + $0x8] sm:$0xff] %v675_v49 }
 0x1c0 PF: > { %p905_p4 = scmp.eq.s32.totalorder %s1296_s14, 1  ;;  %s688_s23 = sshll.u32 %s1509_s4, 4  ;;  %s689_s23 = int_to_ptr.hbm [resolvable:$true] %s688_s23 }
 0x1c1   : > { %s1192_s15 = smov [#allocation11]   ;;  %s1193_s9 = smov 128  }
 0x1c2   : > { %s686_s5 = sshll.u32 %s1192_s15, 4  ;;  %s1194_s25 = smov 8   ;;  %s687_s5 = int_to_ptr.vmem [resolvable:$true] %s686_s5 }
 0x1c3   : > { %885 = dma.vmem_to_hbm [thread:$0]  (%p905_p4), %s687_s5, 256, %s689_s23, [#allocation5], %s1193_s9, %s1193_s9, %s1194_s25  }
 0x1c4   : > { %1162 = dma.done.wait (%p905_p4), [#allocation5], 256  }
 0x1c5   : > { %1164 = vsyncadd (%p905_p4), [#allocation5], 4294967040 }
 0x1c6 PF: > { %s22_s20 = sadd.s32 1, %s1187_s20   ;;  %s1520_s15 = smov %s1171_s16 }
 0x1c7   : > { %p19_p5 = scmp.ge.s32.totalorder %s22_s20, 4   ;;  %s1521_s16 = smov %s1175_s17 }
 0x1c8   : > { %s1522_s17 = smov %s1267_s27  ;;  %s1523_s18 = smov %s1183_s19 }
 0x1c9   : > { %s1524_s19 = smov %s1526_s21  ;;  %21 = sbr.rel (!%p19_p5) target bundleno = 11 (0xb), region = 116 }
 0x1ce   :  { %705 = vsyncpa [#allocation4], 1 }
 0x1cf   :  { %707 = vsyncpa [#allocation4 + $0x1], 1 }
 0x1d0   :  { %708 = vsyncpa [#allocation7], 1 }
 0x1d1   :  { %710 = vsyncpa [#allocation7 + $0x1], 1 }
 0x1d2   :  { %711 = vsyncpa [#allocation10], 1 }
 0x1d3   :  { %713 = vsyncpa [#allocation10 + $0x1], 1 }
 0x1d4   :  { %714 = vsyncpa [#allocation5], 1 }
 0x1d5   :  { %716 = vsyncpa [#allocation5 + $0x1], 1 }

</bundles_post_ra>
